<compile_context>
chip_gen: v6e
topology: v6e:2x2x1
jax: 0.10.0
libtpu: 0.0.40
codegen_flags: <defaults>
</compile_context>

<pallas_src>
import math

import jax
import jax.numpy as jnp
from jax.experimental import pallas as pl
from jax.experimental.pallas import tpu as pltpu


def _make_encoder_kernel(nlayers, nclasses):
    inv_c = 1.0 / float(nclasses)

    def kernel(x_ref, avg_ref, *rest):
        # rest = (w_0, b_0, ..., w_{L-1}, b_{L-1}, out_ref)
        out_ref = rest[-1]
        wb = rest[:-1]

        h = x_ref[...]                                      # (TR*C, ninput)

        # Hidden layers: Linear + ReLU as plain 2-D MXU matmuls.
        for i in range(nlayers - 1):
            w = wb[2 * i][...]                              # (din, dout)
            b = wb[2 * i + 1][...].astype(jnp.float32)      # (1, dout)
            acc = jnp.dot(h, w, preferred_element_type=jnp.float32) + b
            acc = jnp.maximum(acc, 0.0)
            h = acc.astype(w.dtype)                         # storage dtype into next dot

        # Class mean BEFORE the final Linear (exact: no activation after it).
        # avg_ref is a (TR, TR*C) block-diagonal 0/1 matrix -> per-round sum.
        hm = jnp.dot(avg_ref[...], h.astype(jnp.float32),
                     preferred_element_type=jnp.float32) * inv_c      # (TR, d)

        w_last = wb[-2][...]
        b_last = wb[-1][...].astype(jnp.float32)
        out = jnp.dot(hm.astype(w_last.dtype), w_last,
                      preferred_element_type=jnp.float32) + b_last    # (TR, nout)
        # TODO(synk): if noutput << 128 and rounds is very large, pad the last
        # weight's columns to 128 so the store is an unmasked lane-dense vst.
        out_ref[...] = out.astype(out_ref.dtype)

    return kernel


def _default_block_rounds(rounds, nclasses):
    # Aim for >= ~512 rows per tile (good DMA / pipelining efficiency), capped
    # at the actual number of rounds.
    return max(1, min(rounds, pl.cdiv(512, max(nclasses, 1))))


def encoder_forward(fv, weights, biases, *, block_rounds=None):
    """fv: (rounds, nclasses, ninput); weights[i]: (din_i, dout_i); biases[i]: (dout_i,)."""
    rounds, nclasses, ninput = fv.shape
    nlayers = len(weights)
    noutput = weights[-1].shape[1]

    tr = block_rounds if block_rounds is not None else _default_block_rounds(rounds, nclasses)
    tr = max(1, min(tr, rounds))
    ntiles = pl.cdiv(rounds, tr)
    rounds_p = ntiles * tr

    # Pad the rounds axis so it divides evenly into tiles. Padded rows only
    # affect padded output rows (the per-round sum matrix is block-diagonal),
    # and those rows are sliced off below.
    if rounds_p != rounds:
        fv = jnp.pad(fv, ((0, rounds_p - rounds), (0, 0), (0, 0)))

    rows = tr * nclasses
    # Flatten (rounds, nclasses) -> rows in the wrapper (free XLA reshape).
    fv_flat = fv.reshape(rounds_p * nclasses, ninput)

    # Block-diagonal 0/1 "per-round sum" matrix, shared by every tile.
    row_id = jax.lax.broadcasted_iota(jnp.int32, (tr, rows), 0)
    col_grp = jax.lax.broadcasted_iota(jnp.int32, (tr, rows), 1) // nclasses
    avg = (row_id == col_grp).astype(jnp.float32)

    args = [fv_flat, avg]
    in_specs = [
        pl.BlockSpec((rows, ninput), lambda r: (r, 0)),   # tiled along rounds
        pl.BlockSpec((tr, rows), lambda r: (0, 0)),       # shared, full block
    ]
    for w, b in zip(weights, biases):
        b2 = b.reshape(1, -1)
        args += [w, b2]
        in_specs += [
            pl.BlockSpec(w.shape, lambda r: (0, 0)),      # weights: full blocks
            pl.BlockSpec(b2.shape, lambda r: (0, 0)),
        ]

    # Rough VMEM budget: double-buffered tiles + weights + f32 activations.
    itemsize = jnp.dtype(fv.dtype).itemsize
    max_w = max(max(w.shape[1] for w in weights), ninput)
    est = (2 * rows * ninput * itemsize
           + 2 * tr * rows * 4
           + 2 * sum(w.size * jnp.dtype(w.dtype).itemsize for w in weights)
           + 2 * sum(b.size * 4 for b in biases)
           + 3 * rows * max_w * 4
           + 2 * tr * noutput * 4)
    vmem_limit = int(min(48 * 2**20, max(32 * 2**20, 2 * est)))

    out = pl.pallas_call(
        _make_encoder_kernel(nlayers, nclasses),
        grid=(ntiles,),
        in_specs=in_specs,
        out_specs=pl.BlockSpec((tr, noutput), lambda r: (r, 0)),
        out_shape=jax.ShapeDtypeStruct((rounds_p, noutput), fv.dtype),
        compiler_params=pltpu.CompilerParams(
            dimension_semantics=("parallel",),
            vmem_limit_bytes=vmem_limit,
        ),
    )(*args)
    return out[:rounds]


def init_mlp_params(key, ninput, nh, noutput, nlayers):
    """Deterministic init mirroring nn.Linear's U(-1/sqrt(fan_in), 1/sqrt(fan_in))."""
    if nlayers == 1:
        dims = [(ninput, noutput)]
    else:
        dims = [(ninput, nh)] + [(nh, nh)] * (nlayers - 2) + [(nh, noutput)]
    weights, biases = [], []
    for din, dout in dims:
        key, kw, kb = jax.random.split(key, 3)
        bound = 1.0 / math.sqrt(din)
        weights.append(jax.random.uniform(kw, (din, dout), jnp.float32, -bound, bound))
        biases.append(jax.random.uniform(kb, (dout,), jnp.float32, -bound, bound))
    return weights, biases


def reference_forward(fv, weights, biases):
    """Pure-JAX reference matching the PyTorch module semantics (mean AFTER last Linear)."""
    rounds, nclasses, ninput = fv.shape
    h = fv.reshape(rounds * nclasses, ninput)
    for i in range(len(weights) - 1):
        h = jnp.maximum(h @ weights[i] + biases[i], 0.0)
    h = h @ weights[-1] + biases[-1]
    return h.reshape(rounds, nclasses, -1).mean(axis=1)


if __name__ == "__main__":
    # Small shapes consistent with the module's forward.
    rounds, nclasses, ninput, nh, nlayers = 32, 4, 32, 32, 3

    key = jax.random.PRNGKey(0)
    key, kfv = jax.random.split(key)
    fv = jax.random.normal(kfv, (rounds, nclasses, ninput), jnp.float32)
    weights, biases = init_mlp_params(key, ninput, nh, nh, nlayers)

    # block_rounds=8 -> grid=(4,): exercises the tiled, parallel rounds grid.
    out = jax.block_until_ready(encoder_forward(fv, weights, biases, block_rounds=8))

    ref = reference_forward(fv, weights, biases)
    assert out.shape == (rounds, nh), out.shape
    assert jnp.allclose(out, ref, atol=1e-4, rtol=1e-4), float(jnp.max(jnp.abs(out - ref)))

    print("KERNEL_OK")
</pallas_src>

<mosaic_0001>
module attributes {stable_mosaic.version = 11 : i64} {
  func.func @kernel(%arg0: i32, %arg1: memref<32x32xf32, #tpu.memory_space<vmem>>, %arg2: memref<8x32xf32, #tpu.memory_space<vmem>>, %arg3: memref<32x32xf32, #tpu.memory_space<vmem>>, %arg4: memref<1x32xf32, #tpu.memory_space<vmem>>, %arg5: memref<32x32xf32, #tpu.memory_space<vmem>>, %arg6: memref<1x32xf32, #tpu.memory_space<vmem>>, %arg7: memref<32x32xf32, #tpu.memory_space<vmem>>, %arg8: memref<1x32xf32, #tpu.memory_space<vmem>>, %arg9: memref<8x32xf32, #tpu.memory_space<vmem>>) attributes {dimension_semantics = [#tpu.dimension_semantics<parallel>], iteration_bounds = array<i64: 4>, scalar_prefetch = 0 : i64, scratch_operands = 0 : i64, tpu.core_type = #tpu.core_type<tc>, window_params = [{transform_indices = @transform_0, window_bounds = array<i64: 32, 32>}, {pipeline_mode = #tpu.pipeline_mode<synchronous>, transform_indices = @transform_1, window_bounds = array<i64: 8, 32>}, {pipeline_mode = #tpu.pipeline_mode<synchronous>, transform_indices = @transform_2, window_bounds = array<i64: 32, 32>}, {pipeline_mode = #tpu.pipeline_mode<synchronous>, transform_indices = @transform_3, window_bounds = array<i64: 1, 32>}, {pipeline_mode = #tpu.pipeline_mode<synchronous>, transform_indices = @transform_4, window_bounds = array<i64: 32, 32>}, {pipeline_mode = #tpu.pipeline_mode<synchronous>, transform_indices = @transform_5, window_bounds = array<i64: 1, 32>}, {pipeline_mode = #tpu.pipeline_mode<synchronous>, transform_indices = @transform_6, window_bounds = array<i64: 32, 32>}, {pipeline_mode = #tpu.pipeline_mode<synchronous>, transform_indices = @transform_7, window_bounds = array<i64: 1, 32>}, {transform_indices = @transform_8, window_bounds = array<i64: 8, 32>}]} {
    %c0 = arith.constant 0 : index
    %c0_0 = arith.constant 0 : index
    %0 = vector.load %arg1[%c0, %c0_0] : memref<32x32xf32, #tpu.memory_space<vmem>>, vector<32x32xf32>
    %c0_1 = arith.constant 0 : index
    %c0_2 = arith.constant 0 : index
    %1 = vector.load %arg3[%c0_1, %c0_2] : memref<32x32xf32, #tpu.memory_space<vmem>>, vector<32x32xf32>
    %c0_3 = arith.constant 0 : index
    %c0_4 = arith.constant 0 : index
    %2 = vector.load %arg4[%c0_3, %c0_4] : memref<1x32xf32, #tpu.memory_space<vmem>>, vector<1x32xf32>
    %cst = arith.constant dense<0.000000e+00> : vector<32x32xf32>
    %3 = tpu.matmul %0, %1, %cst {dimension_numbers = #tpu.dot_dimension_numbers<[1], [0], [0], [1], [0, 0, 1, 1], [], []>} : vector<32x32xf32>, vector<32x32xf32>, vector<32x32xf32> -> vector<32x32xf32>
    %4 = vector.broadcast %2 : vector<1x32xf32> to vector<32x32xf32>
    %5 = arith.addf %3, %4 : vector<32x32xf32>
    %cst_5 = arith.constant 0.000000e+00 : f32
    %6 = vector.broadcast %cst_5 : f32 to vector<32x32xf32>
    %7 = arith.maximumf %5, %6 : vector<32x32xf32>
    %c0_6 = arith.constant 0 : index
    %c0_7 = arith.constant 0 : index
    %8 = vector.load %arg5[%c0_6, %c0_7] : memref<32x32xf32, #tpu.memory_space<vmem>>, vector<32x32xf32>
    %c0_8 = arith.constant 0 : index
    %c0_9 = arith.constant 0 : index
    %9 = vector.load %arg6[%c0_8, %c0_9] : memref<1x32xf32, #tpu.memory_space<vmem>>, vector<1x32xf32>
    %cst_10 = arith.constant dense<0.000000e+00> : vector<32x32xf32>
    %10 = tpu.matmul %7, %8, %cst_10 {dimension_numbers = #tpu.dot_dimension_numbers<[1], [0], [0], [1], [0, 0, 1, 1], [], []>} : vector<32x32xf32>, vector<32x32xf32>, vector<32x32xf32> -> vector<32x32xf32>
    %11 = vector.broadcast %9 : vector<1x32xf32> to vector<32x32xf32>
    %12 = arith.addf %10, %11 : vector<32x32xf32>
    %cst_11 = arith.constant 0.000000e+00 : f32
    %13 = vector.broadcast %cst_11 : f32 to vector<32x32xf32>
    %14 = arith.maximumf %12, %13 : vector<32x32xf32>
    %c0_12 = arith.constant 0 : index
    %c0_13 = arith.constant 0 : index
    %15 = vector.load %arg2[%c0_12, %c0_13] : memref<8x32xf32, #tpu.memory_space<vmem>>, vector<8x32xf32>
    %cst_14 = arith.constant dense<0.000000e+00> : vector<8x32xf32>
    %16 = tpu.matmul %15, %14, %cst_14 {dimension_numbers = #tpu.dot_dimension_numbers<[1], [0], [0], [1], [0, 0, 1, 1], [], []>} : vector<8x32xf32>, vector<32x32xf32>, vector<8x32xf32> -> vector<8x32xf32>
    %cst_15 = arith.constant 2.500000e-01 : f32
    %17 = vector.broadcast %cst_15 : f32 to vector<8x32xf32>
    %18 = arith.mulf %16, %17 : vector<8x32xf32>
    %c0_16 = arith.constant 0 : index
    %c0_17 = arith.constant 0 : index
    %19 = vector.load %arg7[%c0_16, %c0_17] : memref<32x32xf32, #tpu.memory_space<vmem>>, vector<32x32xf32>
    %c0_18 = arith.constant 0 : index
    %c0_19 = arith.constant 0 : index
    %20 = vector.load %arg8[%c0_18, %c0_19] : memref<1x32xf32, #tpu.memory_space<vmem>>, vector<1x32xf32>
    %cst_20 = arith.constant dense<0.000000e+00> : vector<8x32xf32>
    %21 = tpu.matmul %18, %19, %cst_20 {dimension_numbers = #tpu.dot_dimension_numbers<[1], [0], [0], [1], [0, 0, 1, 1], [], []>} : vector<8x32xf32>, vector<32x32xf32>, vector<8x32xf32> -> vector<8x32xf32>
    %22 = vector.broadcast %20 : vector<1x32xf32> to vector<8x32xf32>
    %23 = arith.addf %21, %22 : vector<8x32xf32>
    %c0_21 = arith.constant 0 : index
    %c0_22 = arith.constant 0 : index
    %24 = vector.load %arg9[%c0_21, %c0_22] : memref<8x32xf32, #tpu.memory_space<vmem>>, vector<8x32xf32>
    tpu.vector_store %arg9[%c0_21, %c0_22], %23 {strides = array<i32>} : memref<8x32xf32, #tpu.memory_space<vmem>>, vector<8x32xf32>,
    return
  }
  func.func @transform_0(%arg0: i32) -> (i32, i32) {
    %c0_i32 = arith.constant 0 : i32
    %c0_i32_0 = arith.constant 0 : i32
    return %arg0, %c0_i32 : i32, i32
  }
  func.func @transform_1(%arg0: i32) -> (i32, i32) {
    %c0_i32 = arith.constant 0 : i32
    %c0_i32_0 = arith.constant 0 : i32
    %c0_i32_1 = arith.constant 0 : i32
    return %c0_i32, %c0_i32_0 : i32, i32
  }
  func.func @transform_2(%arg0: i32) -> (i32, i32) {
    %c0_i32 = arith.constant 0 : i32
    %c0_i32_0 = arith.constant 0 : i32
    %c0_i32_1 = arith.constant 0 : i32
    return %c0_i32, %c0_i32_0 : i32, i32
  }
  func.func @transform_3(%arg0: i32) -> (i32, i32) {
    %c0_i32 = arith.constant 0 : i32
    %c0_i32_0 = arith.constant 0 : i32
    %c0_i32_1 = arith.constant 0 : i32
    return %c0_i32, %c0_i32_0 : i32, i32
  }
  func.func @transform_4(%arg0: i32) -> (i32, i32) {
    %c0_i32 = arith.constant 0 : i32
    %c0_i32_0 = arith.constant 0 : i32
    %c0_i32_1 = arith.constant 0 : i32
    return %c0_i32, %c0_i32_0 : i32, i32
  }
  func.func @transform_5(%arg0: i32) -> (i32, i32) {
    %c0_i32 = arith.constant 0 : i32
    %c0_i32_0 = arith.constant 0 : i32
    %c0_i32_1 = arith.constant 0 : i32
    return %c0_i32, %c0_i32_0 : i32, i32
  }
  func.func @transform_6(%arg0: i32) -> (i32, i32) {
    %c0_i32 = arith.constant 0 : i32
    %c0_i32_0 = arith.constant 0 : i32
    %c0_i32_1 = arith.constant 0 : i32
    return %c0_i32, %c0_i32_0 : i32, i32
  }
  func.func @transform_7(%arg0: i32) -> (i32, i32) {
    %c0_i32 = arith.constant 0 : i32
    %c0_i32_0 = arith.constant 0 : i32
    %c0_i32_1 = arith.constant 0 : i32
    return %c0_i32, %c0_i32_0 : i32, i32
  }
  func.func @transform_8(%arg0: i32) -> (i32, i32) {
    %c0_i32 = arith.constant 0 : i32
    %c0_i32_0 = arith.constant 0 : i32
    return %arg0, %c0_i32 : i32, i32
  }
}

</mosaic_0001>

<bundles_post_ra>
// kernel: tpu_custom_call.1
= control target key start
LH: loop header
LB: loop body
LE: loop exit
PB: predicated region body
PF: predicated region fallthrough
CT: control target
= control target key end

     0   :  { %13 = vsyncpa [#allocation3], 0  ;;  %s1170_s0 = inlined_call_operand.vmem [shape: f32[128,32], index: 0, kind: input, shape index: {}]   ;;  %s1171_s1 = inlined_call_operand.vmem [shape: f32[8,32], index: 1, kind: input, shape index: {}]   ;;  %s1172_s2 = inlined_call_operand.vmem [shape: f32[32,32], index: 2, kind: input, shape index: {}]   ;;  %s1173_s3 = inlined_call_operand.vmem [shape: f32[1,32], index: 3, kind: input, shape index: {}]   ;;  %s1174_s4 = inlined_call_operand.vmem [shape: f32[32,32], index: 4, kind: input, shape index: {}]   ;;  %s1175_s5 = inlined_call_operand.vmem [shape: f32[1,32], index: 5, kind: input, shape index: {}]   ;;  %s1176_s6 = inlined_call_operand.vmem [shape: f32[32,32], index: 6, kind: input, shape index: {}]   ;;  %s1177_s7 = inlined_call_operand.vmem [shape: f32[1,32], index: 7, kind: input, shape index: {}]   ;;  %s1178_s8 = inlined_call_operand.hbm [shape: f32[32,32], index: 8, kind: output, shape index: {}]  }
   0x1   :  { %15 = vsyncpa [#allocation3 + $0x1], 0  ;;  %s1019_s27 = smov 0   ;;  %s1021_s28 = smov 0  }
   0x2   :  { %s1023_s29 = smov 0   ;;  %s1025_s30 = smov 0  }
   0x3 LB: > { %s1040_s9 = sadd.s32 4294967295, %s969_s30   ;;  %s768_s10 = sadd.s32 4294967294, %s969_s30   ;;  %s969_s30 = sphi %s1025_s30, %s1184_s30   ;;  %s965_s29 = sphi %s1023_s29, %s1183_s29   ;;  %s961_s28 = sphi %s1021_s28, %s1182_s28   ;;  %s957_s27 = sphi %s1019_s27, %s1181_s27  }
   0x4   : > { %s1044_s11 = sadd.s32 1, %s969_s30   ;;  %s201_s12 = sadd.s32 1, %s965_s29 }
   0x5   : > { %s198_s13 = ssub.s32 %s969_s30, %s1044_s11  ;;  %p211_p0 = scmp.ne.s32.totalorder %s965_s29, %s961_s28 }
   0x6   : > { %p199_p1 = scmp.eq.s32.totalorder %s198_s13, 0  ;;  %p212_p2 = scmp.eq.s32.totalorder %s1040_s9, 3 }
   0x7   : > { %p217_p3 = scmp.ne.s32.totalorder %s961_s28, %s957_s27  ;;  %p218_p4 = scmp.eq.s32.totalorder %s768_s10, 3 }
   0x8   : > { %s1055_s14 = scalar_select %p199_p1, %s965_s29, %s201_s12  }
   0x9   : > { %p1057_p5 = por %p212_p2, %p211_p0  ;;  %p1061_p6 = por %p218_p4, %p217_p3 }
   0xa   : > { %p771_p7 = scmp.ge.s32.totalorder %s969_s30, 1  ;;  %p266_p8 = scmp.lt.s32.totalorder %s969_s30, 5 }
   0xc   : > { %p267_p9 = pnand %p771_p7, %p266_p8 }
   0xd   : > { %s773_s21 = sshll.u32 (!%p267_p9), %s1040_s9, 2  ;;  %s789_s17 = sshll.u32 (!%p267_p9), %s1040_s9, 7 }
   0xe   : > { %270 = sbr.rel (%p267_p9) target bundleno = 839 (0x347), region = 52  ;;  %p301_p10 = scmp.lt.s32.totalorder (!%p267_p9), %s773_s21, 15 }
   0xf   : > { %s1134_s22 = scalar_lea.hbm (!%p267_p9), %s1178_s8, %s789_s17  ;;  %s973_s9 = smov (!%p267_p9), [#allocation2]  }
  0x10   : > { %s913_s25 = sshll.u32 (!%p267_p9), %s973_s9, 4  ;;  %s914_s25 = int_to_ptr.vmem [resolvable:$false] %s913_s25 }
  0x13   : > { %v313_v0 = vld [vmem:[%s1172_s2 + $0x18] sm:$0xff]  ;;  %v312_v1 = vld [vmem:[%s1172_s2 + $0x10] sm:$0xff]  ;;  %v311_v2 = vld [vmem:[%s1172_s2 + $0x8] sm:$0xff]  ;;  %s1186_s21 = smov (!%p301_p10, %s773_s21), 15  ;;  %vm321_vm0 = vcmask 261120   ;;  %v971_v25 = vmov 0.0  }
  0x14   : > { %818 = vmatprep.subr.mxu0 %v313_v0  ;;  %v310_v3 = vld [vmem:[%s1172_s2] sm:$0xff]  ;;  %s774_s26 = sshll.u32 %s1186_s21, 3  ;;  %v426_v8 = vld [vmem:[%s1174_s4 + $0x18] sm:$0xff]  ;;  %v425_v9 = vld [vmem:[%s1174_s4 + $0x10] sm:$0xff]  ;;  %vm972_vm1 = vmmov 0  }
  0x15   : > { %819 = vmatpush3.msra.mxu0 %v313_v0  ;;  %s304_s13 = scalar_lea.vmem %s1170_s0, %s774_s26  ;;  %832 = vmatprep.subr.mxu1 %v426_v8  ;;  %v424_v10 = vld [vmem:[%s1174_s4 + $0x8] sm:$0xff]  ;;  %v423_v11 = vld [vmem:[%s1174_s4] sm:$0xff]  ;;  %v613_v26 = vld [vmem:[%s1176_s6 + $0x18] sm:$0xff]  ;;  %s297_s26 = sand.u32 1, %s961_s28  }
  0x16   : > { %820 = vmatprep.subr.mxu0 %v312_v1  ;;  %v306_v4 = vld [vmem:[%s304_s13] sm:$0xff]  ;;  %v307_v5 = vld [vmem:[%s304_s13 + $0x8] sm:$0xff]  ;;  %v308_v6 = vld [vmem:[%s304_s13 + $0x10] sm:$0xff]  ;;  %833 = vmatpush3.msra.mxu1 %v426_v8  ;;  %s772_s10 = sshll.u32 %s297_s26, 3  ;;  %s696_s23 = scalar_lea.sflag [#allocation3], %s297_s26 }
  0x17   : > { %821 = vmatpush3.msra.mxu0 %v312_v1  ;;  %826 = vmatprep.mubr.msk.f32.mxu0 %vm321_vm0, %v306_v4  ;;  %v309_v7 = vld [vmem:[%s304_s13 + $0x18] sm:$0xff]  ;;  %v775_v12 = vld [vmem:[%s1173_s3] ss:$0 sm:$0xff]  ;;  %v612_v27 = vld [vmem:[%s1176_s6 + $0x10] sm:$0xff]  ;;  %s299_s18 = scalar_lea.vmem [#allocation2], %s772_s10  ;;  %s915_s10 = scalar_lea.vmem %s914_s25, 256 }
  0x18   : > { %822 = vmatprep.subr.mxu0 %v311_v2  ;;  %834 = vmatprep.subr.mxu1 %v425_v9  ;;  %v780_v30 = vld [vmem:[%s1175_s5] ss:$0 sm:$0xff]  ;;  %v611_v42 = vld [vmem:[%s1176_s6 + $0x8] sm:$0xff]  ;;  %s709_s19 = sshll.u32 %s299_s18, 4  ;;  %s710_s19 = int_to_ptr.vmem [resolvable:$true] %s709_s19 }
  0x19   : > { %823 = vmatpush3.msra.mxu0 %v311_v2  ;;  %835 = vmatpush3.msra.mxu1 %v425_v9  ;;  %v535_v41 = vld [vmem:[%s1171_s1] sm:$0xff]  ;;  %s909_s24 = scalar_lea.vmem %s710_s19, 128  ;;  %p916_p0 = scmp.lt.s32.totalorder %s710_s19, %s914_s25 }
  0x1a   : > { %824 = vmatprep.subr.mxu0 %v310_v3  ;;  %836 = vmatprep.subr.mxu1 %v424_v10  ;;  %v610_v43 = vld [vmem:[%s1176_s6] sm:$0xff]  ;;  %p910_p11 = scmp.ne.s32.totalorder %s710_s19, %s909_s24  ;;  %p917_p1 = scmp.lt.s32.totalorder %s915_s10, %s909_s24 }
  0x1b   : > { %825 = vmatpush3.msra.mxu0 %v310_v3  ;;  %837 = vmatpush3.msra.mxu1 %v424_v10  ;;  %v786_v47 = vld [vmem:[%s1177_s7] ss:$0 sm:$0xff] }
  0x1c   : > { %827 = vmatmul.mubr.msk.f32.vlgmr.msra.gmra.mxu0 %vm321_vm0, %v307_v5  ;;  %838 = vmatprep.subr.mxu1 %v423_v11  ;;  %p911_p12 = pnand %p910_p11, %p1057_p5  ;;  %p918_p2 = por %p917_p1, %p916_p0 }
  0x1d   : > { %829 = vmatprep.mubr.msk.f32.mxu0 %vm321_vm0, %v308_v6  ;;  %839 = vmatpush3.msra.mxu1 %v423_v11 }
  0x1e   : > { %846 = vmatprep.subr.mxu0 %v971_v25  ;;  %857 = vmatprep.subr.mxu1 %v971_v25  ;;  %p912_p13 = pneg %p911_p12 }
  0x20   : > { %830 = vmatmul.mubr.msk.f32.gmra.mxu0 %vm321_vm0, %v309_v7  ;;  %p919_p3 = pnand %p918_p2, %p912_p13 }
  0x21   : > { %854 = vmatprep.mubr.msk.f32.mxu0 %vm972_vm1, %v971_v25 }
  0xdc   : > { %v828_v13 = vpop.f32.mrf.mxu0 }
  0xdd   : > { %v406_v14 = vadd.f32 %v828_v13, %v775_v12 }
  0xde   : > { %v400_v15 = vpop.f32.mrf.mxu0 }
  0xdf   : > { %v401_v16 = vadd.f32 %v775_v12, %v400_v15  ;;  %v420_v19 = vmax.f32 %v406_v14, 0.0 }
  0xe0   : > { %v831_v17 = vpop.f32.mrf.mxu0 }
  0xe1   : > { %v419_v18 = vmax.f32 %v401_v16, 0.0  ;;  %v416_v20 = vadd.f32 %v831_v17, %v775_v12 }
  0xe2   : > { %v410_v21 = vpop.f32.mrf.mxu0 }
  0xe3   : > { %v411_v22 = vadd.f32 %v775_v12, %v410_v21  ;;  %840 = vmatprep.mubr.msk.f32.mxu1 %vm321_vm0, %v419_v18  ;;  %v422_v24 = vmax.f32 %v416_v20, 0.0 }
  0xe4   : > { %841 = vmatmul.mubr.msk.f32.vlgmr.msra.gmra.mxu1 %vm321_vm0, %v420_v19 }
  0xe5   : > { %v421_v23 = vmax.f32 %v411_v22, 0.0  ;;  %858 = vmatpush3.msra.mxu1 %v613_v26 }
  0xe6   : > { %859 = vmatprep.subr.mxu1 %v971_v25 }
  0xe7   : > { %843 = vmatprep.mubr.msk.f32.mxu1 %vm321_vm0, %v421_v23  ;;  %860 = vmatpush3.msra.mxu1 %v612_v27 }
  0xe8   : > { %844 = vmatmul.mubr.msk.f32.gmra.mxu1 %vm321_vm0, %v422_v24  ;;  %861 = vmatprep.subr.mxu1 %v971_v25 }
  0xe9   : > { %865 = vmatprep.mubr.msk.f32.mxu1 %vm972_vm1, %v971_v25  ;;  %862 = vmatpush3.msra.mxu1 %v611_v42 }
  0xea   : > { %863 = vmatprep.subr.mxu1 %v971_v25 }
  0xeb   : > { %864 = vmatpush3.msra.mxu1 %v610_v43 }
 0x1a4   : > { %v842_v28 = vpop.f32.mrf.mxu1 }
 0x1a5   : > { %v518_v34 = vadd.f32 %v842_v28, %v780_v30 }
 0x1a6   : > { %v512_v29 = vpop.f32.mrf.mxu1 }
 0x1a7   : > { %v513_v37 = vadd.f32 %v780_v30, %v512_v29  ;;  %v532_v39 = vmax.f32 %v518_v34, 0.0 }
 0x1a8   : > { %v845_v31 = vpop.f32.mrf.mxu1 }
 0x1a9   : > { %v528_v32 = vadd.f32 %v845_v31, %v780_v30  ;;  %v531_v40 = vmax.f32 %v513_v37, 0.0 }
 0x1aa   : > { %v522_v33 = vpop.f32.mrf.mxu1 }
 0x1ab   : > { %v534_v35 = vmax.f32 %v528_v32, 0.0  ;;  %v523_v36 = vadd.f32 %v780_v30, %v522_v33 }
 0x1ad   : > { %v533_v38 = vmax.f32 %v523_v36, 0.0  ;;  %847 = vmatpush3.msra.mxu0 %v534_v35 }
 0x1ae   : > { %848 = vmatprep.subr.mxu0 %v971_v25 }
 0x1af   : > { %849 = vmatpush3.msra.mxu0 %v533_v38 }
 0x1b0   : > { %850 = vmatprep.subr.mxu0 %v971_v25 }
 0x1b1   : > { %851 = vmatpush3.msra.mxu0 %v532_v39 }
 0x1b2   : > { %852 = vmatprep.subr.mxu0 %v971_v25 }
 0x1b3   : > { %853 = vmatpush3.msra.mxu0 %v531_v40 }
 0x1b4   : > { %855 = vmatmul.mubr.msk.f32.vlgmr.msra.gmra.mxu0 %vm321_vm0, %v535_v41 }
 0x274   : > { %v605_v44 = vpop.f32.mrf.mxu0 }
 0x275   : > { %v609_v45 = vmul.f32 0.25, %v605_v44 }
 0x276   : > { %v856_v46 = vpop.f32.mrf.mxu0 }
 0x277   : > { %866 = vmatmul.mubr.msk.f32.vlgmr.msra.gmra.mxu1 %vm321_vm0, %v609_v45 }
 0x337   : > { %v690_v48 = vpop.f32.mrf.mxu1 }
 0x338   : > { %v691_v49 = vadd.f32 %v786_v47, %v690_v48 }
 0x339   : > { %v867_v50 = vpop.f32.mrf.mxu1 }
 0x33a   : > { %694 = vst.msk [vmem:[%s299_s18] sm:$0xff] %vm321_vm0, %v691_v49 }
 0x33b   : > { %922 = shalt.err (!%p919_p3)
}
 0x33c   : > { %s923_s12 = scalar_lea.hbm %s1134_s22, 128  ;;  %s927_s17 = scalar_lea.hbm %s1178_s8, 512 }
 0x33d   : > { %p924_p4 = scmp.ne.s32.totalorder %s1134_s22, %s923_s12  ;;  %p928_p9 = scmp.lt.s32.totalorder %s1134_s22, %s1178_s8 }
 0x33e   : > { %p929_p10 = scmp.lt.s32.totalorder %s927_s17, %s923_s12 }
 0x33f   : > { %p925_p7 = pnand %p924_p4, %p1057_p5 }
 0x340   : > { %p930_p11 = por %p929_p10, %p928_p9 }
 0x341   : > { %p926_p8 = pneg %p925_p7 }
 0x343   : > { %p931_p12 = pnand %p930_p11, %p926_p8 }
 0x345   : > { %934 = shalt.err (!%p931_p12)
}
 0x346   : > { %868 = dma.vmem_to_hbm [thread:$0]  (%p1057_p5), %s710_s19, 128, %s1134_s22, %s696_s23  }
 0x347 PF: > { %p874_p13 = scmp.ge.s32.totalorder %s969_s30, 2  ;;  %s721_s21 = sand.u32 1, %s957_s27  }
 0x348   : > { %s722_s24 = scalar_lea.sflag [#allocation3], %s721_s21 }
 0x349   : > { %p871_p0 = pnand %p874_p13, %p1061_p6 }
 0x34b   : > { %p872_p1 = pneg %p871_p0 }
 0x34d   : > { %952 = dma.done.wait (%p872_p1), %s722_s24, 128  }
 0x34e   : > { %954 = vsyncadd (%p872_p1), %s722_s24, 4294967168  ;;  %p18_p2 = scmp.ge.s32.totalorder %s1044_s11, 6   ;;  %s1181_s27 = smov %s961_s28 }
 0x34f   : > { %s1182_s28 = smov %s965_s29  ;;  %s1183_s29 = smov %s1055_s14 }
 0x350   : > { %s1184_s30 = smov %s1044_s11  ;;  %20 = sbr.rel (!%p18_p2) target bundleno = 3 (0x3), region = 87 }
 0x355   :  { %727 = vsyncpa [#allocation3], 1 }
 0x356   :  { %729 = vsyncpa [#allocation3 + $0x1], 1 }

</bundles_post_ra>
